<compile_context>
chip_gen: v5e
topology: v5e:2x2
jax: 0.10.0
libtpu: 0.0.40
codegen_flags: <defaults>
</compile_context>

<pallas_src>
import math
import functools

import jax
import jax.numpy as jnp
from jax.experimental import pallas as pl
from jax.experimental.pallas import tpu as pltpu


# ----------------------------------------------------------------------------
# Kernel bodies
# ----------------------------------------------------------------------------

def _attention_core(q, k, v, o_ref, acc_ref, *, num_heads, head_dim, attn_dtype):
    """Batched-head SDPA on already-projected activations.

    q: (Tq, hidden) f32, k/v: (Sk, hidden) f32.  Writes o_ref[0] = (Tq, hidden).
    """
    Dh = head_dim
    approx_recip = jnp.dtype(attn_dtype) != jnp.dtype(jnp.float32)

    # Split heads into head-major (H, T, Dh) batches without minor-dim
    # reshapes: static lane slices + a leading-axis stack (always lowers).
    def split_heads(x):
        return jnp.stack(
            [x[:, h * Dh:(h + 1) * Dh] for h in range(num_heads)], axis=0)

    q3 = split_heads(q).astype(attn_dtype)   # (H, Tq, Dh)
    k3 = split_heads(k).astype(attn_dtype)   # (H, Sk, Dh)
    v3 = split_heads(v).astype(attn_dtype)   # (H, Sk, Dh)

    # One batched QK^T over all heads; contracts Dh on the last dim of both
    # operands (no explicit .T / XLU transpose); f32 accumulation on the MXU.
    s = jnp.einsum("hqd,hkd->hqk", q3, k3,
                   preferred_element_type=jnp.float32)
    s = s * (1.0 / math.sqrt(Dh))                       # (H, Tq, Sk) f32

    # f32 max-subtracted softmax; denominator reciprocal on the EUP when the
    # matmul inputs are reduced precision anyway (exact recip in full-f32 mode).
    s = s - jnp.max(s, axis=-1, keepdims=True)
    p = jnp.exp(s)
    p = p * pl.reciprocal(jnp.sum(p, axis=-1, keepdims=True), approx=approx_recip)

    # Batched PV, f32 accumulation.
    ctx = jnp.einsum("hqk,hkd->hqd", p.astype(attn_dtype), v3,
                     preferred_element_type=jnp.float32)   # (H, Tq, Dh)

    # Merge heads into one lane-dense (Tq, hidden) slab in VMEM scratch, then a
    # single full-width store to the pipelined output block.
    for h in range(num_heads):
        acc_ref[:, h * Dh:(h + 1) * Dh] = ctx[h]
    o_ref[0] = acc_ref[...].astype(o_ref.dtype)


def _mha_fused_kv_kernel(xq_ref, xkv_ref, wq_ref, bq_ref, wkv_ref, bkv_ref,
                         o_ref, acc_ref, *, num_heads, head_dim, attn_dtype):
    """Self/cross attention where key and value come from the SAME tensor."""
    hidden = num_heads * head_dim
    # Q projection on the query tile; single fused K|V projection (N=2*hidden)
    # on the shared key/value activation -> one wide MXU matmul, one load of x.
    q = jnp.dot(xq_ref[0], wq_ref[...],
                preferred_element_type=jnp.float32) + bq_ref[...]
    kv = jnp.dot(xkv_ref[0], wkv_ref[...],
                 preferred_element_type=jnp.float32) + bkv_ref[...]
    _attention_core(q, kv[:, :hidden], kv[:, hidden:], o_ref, acc_ref,
                    num_heads=num_heads, head_dim=head_dim,
                    attn_dtype=attn_dtype)


def _mha_split_kv_kernel(xq_ref, xk_ref, xv_ref, wq_ref, bq_ref,
                         wk_ref, bk_ref, wv_ref, bv_ref,
                         o_ref, acc_ref, *, num_heads, head_dim, attn_dtype):
    """General path: distinct key and value input tensors."""
    q = jnp.dot(xq_ref[0], wq_ref[...],
                preferred_element_type=jnp.float32) + bq_ref[...]
    k = jnp.dot(xk_ref[0], wk_ref[...],
                preferred_element_type=jnp.float32) + bk_ref[...]
    v = jnp.dot(xv_ref[0], wv_ref[...],
                preferred_element_type=jnp.float32) + bv_ref[...]
    _attention_core(q, k, v, o_ref, acc_ref,
                    num_heads=num_heads, head_dim=head_dim,
                    attn_dtype=attn_dtype)


# ----------------------------------------------------------------------------
# Wrapper
# ----------------------------------------------------------------------------

def prepare_params(params):
    """One-time host-side weight prep (hoisted out of the per-call hot path).

    Transposes torch-layout (out, in) weights to (in, out) and builds the fused
    K|V weight/bias for the shared key==value path.
    """
    hidden = params["wq"].shape[0]
    wq_t = jnp.asarray(params["wq"]).T
    wk_t = jnp.asarray(params["wk"]).T
    wv_t = jnp.asarray(params["wv"]).T
    return {
        "wq_t": wq_t,
        "bq": jnp.asarray(params["bq"]).reshape(1, hidden),
        "wk_t": wk_t,
        "bk": jnp.asarray(params["bk"]).reshape(1, hidden),
        "wv_t": wv_t,
        "bv": jnp.asarray(params["bv"]).reshape(1, hidden),
        "wkv_t": jnp.concatenate([wk_t, wv_t], axis=1),                 # (in, 2*hidden)
        "bkv": jnp.concatenate([params["bk"], params["bv"]]).reshape(1, 2 * hidden),
    }


def multihead_attention(query, key=None, value=None, head_mask=None,
                        attn_mask=None, *, prepared, num_heads,
                        q_block=None, attn_dtype=jnp.bfloat16):
    """Pallas implementation of MultiheadAttention.forward (eval mode).

    query: (B, S, hidden); key: (B, S_k, hidden); value defaults to key
    (torch's `value is None and key is not None` branch).
    Returns (context, None), matching the torch module.
    """
    if head_mask is not None:
        # torch forwards head_mask as SDPA's attn_mask -> it WOULD change results.
        raise NotImplementedError("head_mask is not supported by this kernel")
    # attn_mask is accepted but never used by the torch module -> ignored here too.
    if key is None:
        # TODO(synk): torch's key=None branch applies key_layer to a 4-D
        # head-transposed tensor (only valid for num_heads == 1); not reproduced.
        raise NotImplementedError("pass `key` explicitly (torch's key=None branch "
                                  "is shape-inconsistent for num_heads > 1)")
    fused_kv = value is None or (value is key)
    if value is None:
        value = key

    B, S, hidden = query.shape
    Bk, Sk, Hk = key.shape
    assert Bk == B and Hk == hidden, "batch / hidden mismatch between query and key"
    assert value.shape == key.shape, "key and value must share (B, S_k, hidden)"
    head_dim = hidden // num_heads
    assert head_dim * num_heads == hidden

    # Query-sequence tiling: keeps VMEM bounded at realistic S and adds a second
    # parallel grid axis (v7x dual TensorCore utilization at small batch).
    if q_block is None:
        q_block = 256 if (S % 256 == 0) else S
    assert S % q_block == 0, "q_block must divide the query sequence length"
    n_q = S // q_block
    grid = (B, n_q)

    xq_spec = pl.BlockSpec((1, q_block, hidden), lambda b, qi: (b, qi, 0))
    xkv_spec = pl.BlockSpec((1, Sk, hidden), lambda b, qi: (b, 0, 0))
    out_spec = pl.BlockSpec((1, q_block, hidden), lambda b, qi: (b, qi, 0))

    def w_spec(n_out):
        return pl.BlockSpec((hidden, n_out), lambda b, qi: (0, 0))

    def b_spec(n_out):
        return pl.BlockSpec((1, n_out), lambda b, qi: (0, 0))

    # Advisory cost estimate so XLA schedules around the custom call sensibly.
    proj_flops = 2 * B * (S * hidden * hidden + n_q * Sk * hidden * 2 * hidden)
    attn_flops = 4 * B * num_heads * S * Sk * head_dim
    cost = pl.CostEstimate(
        flops=int(proj_flops + attn_flops),
        transcendentals=int(B * num_heads * S * Sk),
        bytes_accessed=int(4 * (query.size + key.size + value.size
                                + B * S * hidden + 3 * hidden * hidden + 3 * hidden)),
    )
    compiler_params = pltpu.CompilerParams(
        dimension_semantics=("parallel", "parallel"))
    scratch = [pltpu.VMEM((q_block, hidden), jnp.float32)]

    if fused_kv:
        kernel = functools.partial(_mha_fused_kv_kernel, num_heads=num_heads,
                                   head_dim=head_dim, attn_dtype=attn_dtype)
        out = pl.pallas_call(
            kernel,
            out_shape=jax.ShapeDtypeStruct((B, S, hidden), query.dtype),
            grid_spec=pltpu.PrefetchScalarGridSpec(
                num_scalar_prefetch=0,
                grid=grid,
                in_specs=[xq_spec, xkv_spec,
                          w_spec(hidden), b_spec(hidden),
                          w_spec(2 * hidden), b_spec(2 * hidden)],
                out_specs=out_spec,
                scratch_shapes=scratch),
            compiler_params=compiler_params,
            cost_estimate=cost,
        )(query, key, prepared["wq_t"], prepared["bq"],
          prepared["wkv_t"], prepared["bkv"])
    else:
        kernel = functools.partial(_mha_split_kv_kernel, num_heads=num_heads,
                                   head_dim=head_dim, attn_dtype=attn_dtype)
        out = pl.pallas_call(
            kernel,
            out_shape=jax.ShapeDtypeStruct((B, S, hidden), query.dtype),
            grid_spec=pltpu.PrefetchScalarGridSpec(
                num_scalar_prefetch=0,
                grid=grid,
                in_specs=[xq_spec, xkv_spec, xkv_spec,
                          w_spec(hidden), b_spec(hidden),
                          w_spec(hidden), b_spec(hidden),
                          w_spec(hidden), b_spec(hidden)],
                out_specs=out_spec,
                scratch_shapes=scratch),
            compiler_params=compiler_params,
            cost_estimate=cost,
        )(query, key, value, prepared["wq_t"], prepared["bq"],
          prepared["wk_t"], prepared["bk"], prepared["wv_t"], prepared["bv"])
    return out, None


# ----------------------------------------------------------------------------
# Pure-JAX reference (mirrors the torch forward, eval mode)
# ----------------------------------------------------------------------------

def _reference(query, key, value, params, num_heads):
    B, S, hidden = query.shape
    Dh = hidden // num_heads

    def lin(x, w, b):
        return x @ w.T + b

    def split(x):
        b, s, _ = x.shape
        return x.reshape(b, s, num_heads, Dh).transpose(0, 2, 1, 3)

    q = split(lin(query, params["wq"], params["bq"]))
    k = split(lin(key, params["wk"], params["bk"]))
    v = split(lin(value, params["wv"], params["bv"]))

    s = jnp.einsum("bhqd,bhkd->bhqk", q, k) / math.sqrt(Dh)
    p = jax.nn.softmax(s, axis=-1)
    ctx = jnp.einsum("bhqk,bhkd->bhqd", p, v)
    return ctx.transpose(0, 2, 1, 3).reshape(B, S, hidden)


# ----------------------------------------------------------------------------
# Test driver
# ----------------------------------------------------------------------------

if __name__ == "__main__":
    B, S, hidden, num_heads = 2, 8, 32, 4
    Sk_cross = 16
    dropout = 0.1  # eval mode -> unused

    root = jax.random.PRNGKey(0)
    kq, kk, kv, kck, kwq, kwk, kwv, kbq, kbk, kbv = jax.random.split(root, 10)

    # Deterministic nn.Linear-style init: uniform(-1/sqrt(in), 1/sqrt(in)).
    bound = 1.0 / math.sqrt(hidden)
    params = {
        "wq": jax.random.uniform(kwq, (hidden, hidden), jnp.float32, -bound, bound),
        "wk": jax.random.uniform(kwk, (hidden, hidden), jnp.float32, -bound, bound),
        "wv": jax.random.uniform(kwv, (hidden, hidden), jnp.float32, -bound, bound),
        "bq": jax.random.uniform(kbq, (hidden,), jnp.float32, -bound, bound),
        "bk": jax.random.uniform(kbk, (hidden,), jnp.float32, -bound, bound),
        "bv": jax.random.uniform(kbv, (hidden,), jnp.float32, -bound, bound),
    }
    prepared = prepare_params(params)

    query = jax.random.normal(kq, (B, S, hidden), jnp.float32)
    key = jax.random.normal(kk, (B, S, hidden), jnp.float32)
    value = jax.random.normal(kv, (B, S, hidden), jnp.float32)
    key_cross = jax.random.normal(kck, (B, Sk_cross, hidden), jnp.float32)

    checks = []

    # 1) Self-attention, value defaults to key (fused K|V path), full-f32 math.
    out1, attn = multihead_attention(query, query, prepared=prepared,
                                     num_heads=num_heads,
                                     attn_dtype=jnp.float32)
    out1 = jax.block_until_ready(out1)
    assert attn is None and out1.shape == (B, S, hidden)
    checks.append(("self_f32", out1,
                   _reference(query, query, query, params, num_heads), 5e-4))

    # 2) Distinct q/k/v (split path), bf16 MXU inputs with f32 accumulation.
    out2, _ = multihead_attention(query, key, value, prepared=prepared,
                                  num_heads=num_heads,
                                  attn_dtype=jnp.bfloat16)
    out2 = jax.block_until_ready(out2)
    checks.append(("qkv_bf16", out2,
                   _reference(query, key, value, params, num_heads), 3e-2))

    # 3) Cross-attention (different key length), fused K|V path, bf16 default.
    out3, _ = multihead_attention(query, key_cross, prepared=prepared,
                                  num_heads=num_heads)
    out3 = jax.block_until_ready(out3)
    checks.append(("cross_bf16", out3,
                   _reference(query, key_cross, key_cross, params, num_heads), 3e-2))

    for name, got, want, tol in checks:
        assert got.shape == want.shape, f"{name}: shape {got.shape} vs {want.shape}"
        err = float(jnp.max(jnp.abs(got - want)))
        assert err < tol, f"{name}: max abs err {err} >= {tol}"

    print("KERNEL_OK")
</pallas_src>

<mosaic_0001>
module attributes {stable_mosaic.version = 11 : i64} {
  func.func @_mha_fused_kv_kernel(%arg0: i32, %arg1: i32, %arg2: memref<1x8x32xf32, #tpu.memory_space<vmem>>, %arg3: memref<1x8x32xf32, #tpu.memory_space<vmem>>, %arg4: memref<32x32xf32, #tpu.memory_space<vmem>>, %arg5: memref<1x32xf32, #tpu.memory_space<vmem>>, %arg6: memref<32x64xf32, #tpu.memory_space<vmem>>, %arg7: memref<1x64xf32, #tpu.memory_space<vmem>>, %arg8: memref<1x8x32xf32, #tpu.memory_space<vmem>>, %arg9: memref<8x32xf32, #tpu.memory_space<vmem>>) attributes {dimension_semantics = [#tpu.dimension_semantics<parallel>, #tpu.dimension_semantics<parallel>], iteration_bounds = array<i64: 2, 1>, scalar_prefetch = 0 : i64, scratch_operands = 1 : i64, tpu.core_type = #tpu.core_type<tc>, window_params = [{transform_indices = @transform_0, window_bounds = array<i64: 1, 8, 32>}, {transform_indices = @transform_1, window_bounds = array<i64: 1, 8, 32>}, {pipeline_mode = #tpu.pipeline_mode<synchronous>, transform_indices = @transform_2, window_bounds = array<i64: 32, 32>}, {pipeline_mode = #tpu.pipeline_mode<synchronous>, transform_indices = @transform_3, window_bounds = array<i64: 1, 32>}, {pipeline_mode = #tpu.pipeline_mode<synchronous>, transform_indices = @transform_4, window_bounds = array<i64: 32, 64>}, {pipeline_mode = #tpu.pipeline_mode<synchronous>, transform_indices = @transform_5, window_bounds = array<i64: 1, 64>}, {transform_indices = @transform_6, window_bounds = array<i64: 1, 8, 32>}]} {
    %c0 = arith.constant 0 : index
    %c0_0 = arith.constant 0 : index
    %c0_1 = arith.constant 0 : index
    %0 = vector.load %arg2[%c0, %c0_0, %c0_1] : memref<1x8x32xf32, #tpu.memory_space<vmem>>, vector<1x8x32xf32>
    %1 = vector.shape_cast %0 : vector<1x8x32xf32> to vector<8x32xf32>
    %c0_2 = arith.constant 0 : index
    %c0_3 = arith.constant 0 : index
    %2 = vector.load %arg4[%c0_2, %c0_3] : memref<32x32xf32, #tpu.memory_space<vmem>>, vector<32x32xf32>
    %cst = arith.constant dense<0.000000e+00> : vector<8x32xf32>
    %3 = tpu.matmul %1, %2, %cst {dimension_numbers = #tpu.dot_dimension_numbers<[1], [0], [0], [1], [0, 0, 1, 1], [], []>} : vector<8x32xf32>, vector<32x32xf32>, vector<8x32xf32> -> vector<8x32xf32>
    %c0_4 = arith.constant 0 : index
    %c0_5 = arith.constant 0 : index
    %4 = vector.load %arg5[%c0_4, %c0_5] : memref<1x32xf32, #tpu.memory_space<vmem>>, vector<1x32xf32>
    %5 = vector.broadcast %4 : vector<1x32xf32> to vector<8x32xf32>
    %6 = arith.addf %3, %5 : vector<8x32xf32>
    %c0_6 = arith.constant 0 : index
    %c0_7 = arith.constant 0 : index
    %c0_8 = arith.constant 0 : index
    %7 = vector.load %arg3[%c0_6, %c0_7, %c0_8] : memref<1x8x32xf32, #tpu.memory_space<vmem>>, vector<1x8x32xf32>
    %8 = vector.shape_cast %7 : vector<1x8x32xf32> to vector<8x32xf32>
    %c0_9 = arith.constant 0 : index
    %c0_10 = arith.constant 0 : index
    %9 = vector.load %arg6[%c0_9, %c0_10] : memref<32x64xf32, #tpu.memory_space<vmem>>, vector<32x64xf32>
    %cst_11 = arith.constant dense<0.000000e+00> : vector<8x64xf32>
    %10 = tpu.matmul %8, %9, %cst_11 {dimension_numbers = #tpu.dot_dimension_numbers<[1], [0], [0], [1], [0, 0, 1, 1], [], []>} : vector<8x32xf32>, vector<32x64xf32>, vector<8x64xf32> -> vector<8x64xf32>
    %c0_12 = arith.constant 0 : index
    %c0_13 = arith.constant 0 : index
    %11 = vector.load %arg7[%c0_12, %c0_13] : memref<1x64xf32, #tpu.memory_space<vmem>>, vector<1x64xf32>
    %12 = vector.broadcast %11 : vector<1x64xf32> to vector<8x64xf32>
    %13 = arith.addf %10, %12 : vector<8x64xf32>
    %14 = vector.extract_strided_slice %13 {offsets = [0, 0], sizes = [8, 32], strides = [1, 1]} : vector<8x64xf32> to vector<8x32xf32>
    %15 = vector.extract_strided_slice %13 {offsets = [0, 32], sizes = [8, 32], strides = [1, 1]} : vector<8x64xf32> to vector<8x32xf32>
    %16 = vector.extract_strided_slice %6 {offsets = [0, 0], sizes = [8, 8], strides = [1, 1]} : vector<8x32xf32> to vector<8x8xf32>
    %17 = vector.extract_strided_slice %6 {offsets = [0, 8], sizes = [8, 8], strides = [1, 1]} : vector<8x32xf32> to vector<8x8xf32>
    %18 = vector.extract_strided_slice %6 {offsets = [0, 16], sizes = [8, 8], strides = [1, 1]} : vector<8x32xf32> to vector<8x8xf32>
    %19 = vector.extract_strided_slice %6 {offsets = [0, 24], sizes = [8, 8], strides = [1, 1]} : vector<8x32xf32> to vector<8x8xf32>
    %20 = vector.shape_cast %16 : vector<8x8xf32> to vector<1x8x8xf32>
    %21 = vector.shape_cast %17 : vector<8x8xf32> to vector<1x8x8xf32>
    %22 = vector.shape_cast %18 : vector<8x8xf32> to vector<1x8x8xf32>
    %23 = vector.shape_cast %19 : vector<8x8xf32> to vector<1x8x8xf32>
    %24 = tpu.concatenate %20, %21, %22, %23 in 0 : vector<1x8x8xf32>, vector<1x8x8xf32>, vector<1x8x8xf32>, vector<1x8x8xf32> -> vector<4x8x8xf32>
    %25 = vector.extract_strided_slice %14 {offsets = [0, 0], sizes = [8, 8], strides = [1, 1]} : vector<8x32xf32> to vector<8x8xf32>
    %26 = vector.extract_strided_slice %14 {offsets = [0, 8], sizes = [8, 8], strides = [1, 1]} : vector<8x32xf32> to vector<8x8xf32>
    %27 = vector.extract_strided_slice %14 {offsets = [0, 16], sizes = [8, 8], strides = [1, 1]} : vector<8x32xf32> to vector<8x8xf32>
    %28 = vector.extract_strided_slice %14 {offsets = [0, 24], sizes = [8, 8], strides = [1, 1]} : vector<8x32xf32> to vector<8x8xf32>
    %29 = vector.shape_cast %25 : vector<8x8xf32> to vector<1x8x8xf32>
    %30 = vector.shape_cast %26 : vector<8x8xf32> to vector<1x8x8xf32>
    %31 = vector.shape_cast %27 : vector<8x8xf32> to vector<1x8x8xf32>
    %32 = vector.shape_cast %28 : vector<8x8xf32> to vector<1x8x8xf32>
    %33 = tpu.concatenate %29, %30, %31, %32 in 0 : vector<1x8x8xf32>, vector<1x8x8xf32>, vector<1x8x8xf32>, vector<1x8x8xf32> -> vector<4x8x8xf32>
    %34 = vector.extract_strided_slice %15 {offsets = [0, 0], sizes = [8, 8], strides = [1, 1]} : vector<8x32xf32> to vector<8x8xf32>
    %35 = vector.extract_strided_slice %15 {offsets = [0, 8], sizes = [8, 8], strides = [1, 1]} : vector<8x32xf32> to vector<8x8xf32>
    %36 = vector.extract_strided_slice %15 {offsets = [0, 16], sizes = [8, 8], strides = [1, 1]} : vector<8x32xf32> to vector<8x8xf32>
    %37 = vector.extract_strided_slice %15 {offsets = [0, 24], sizes = [8, 8], strides = [1, 1]} : vector<8x32xf32> to vector<8x8xf32>
    %38 = vector.shape_cast %34 : vector<8x8xf32> to vector<1x8x8xf32>
    %39 = vector.shape_cast %35 : vector<8x8xf32> to vector<1x8x8xf32>
    %40 = vector.shape_cast %36 : vector<8x8xf32> to vector<1x8x8xf32>
    %41 = vector.shape_cast %37 : vector<8x8xf32> to vector<1x8x8xf32>
    %42 = tpu.concatenate %38, %39, %40, %41 in 0 : vector<1x8x8xf32>, vector<1x8x8xf32>, vector<1x8x8xf32>, vector<1x8x8xf32> -> vector<4x8x8xf32>
    "tpu.trace_start"() <{level = 10 : i32, message = "hqd,hkd->hqk"}> : () -> ()
    %cst_14 = arith.constant dense<0.000000e+00> : vector<4x8x8xf32>
    %43 = tpu.matmul %24, %33, %cst_14 {dimension_numbers = #tpu.dot_dimension_numbers<[2], [2], [1], [1], [0, 0, 0, 1, 1, 1], [0], [0]>} : vector<4x8x8xf32>, vector<4x8x8xf32>, vector<4x8x8xf32> -> vector<4x8x8xf32>
    "tpu.trace_stop"() : () -> ()
    %cst_15 = arith.constant 0.353553385 : f32
    %44 = vector.broadcast %cst_15 : f32 to vector<4x8x8xf32>
    %45 = arith.mulf %43, %44 : vector<4x8x8xf32>
    %cst_16 = arith.constant dense<0xFF800000> : vector<4x8xf32>
    %46 = vector.multi_reduction <maximumf>, %45, %cst_16 [2] : vector<4x8x8xf32> to vector<4x8xf32>
    %47 = vector.shape_cast %46 : vector<4x8xf32> to vector<4x8x1xf32>
    %48 = vector.broadcast %47 : vector<4x8x1xf32> to vector<4x8x8xf32>
    %49 = arith.subf %45, %48 : vector<4x8x8xf32>
    %50 = math.exp %49 : vector<4x8x8xf32>
    %cst_17 = arith.constant dense<0.000000e+00> : vector<4x8xf32>
    %51 = vector.multi_reduction <add>, %50, %cst_17 [2] : vector<4x8x8xf32> to vector<4x8xf32>
    %52 = vector.shape_cast %51 : vector<4x8xf32> to vector<4x8x1xf32>
    %53 = tpu.reciprocal %52 : vector<4x8x1xf32> -> vector<4x8x1xf32>
    %54 = vector.broadcast %53 : vector<4x8x1xf32> to vector<4x8x8xf32>
    %55 = arith.mulf %50, %54 : vector<4x8x8xf32>
    "tpu.trace_start"() <{level = 10 : i32, message = "hqk,hkd->hqd"}> : () -> ()
    %cst_18 = arith.constant dense<0.000000e+00> : vector<4x8x8xf32>
    %56 = tpu.matmul %55, %42, %cst_18 {dimension_numbers = #tpu.dot_dimension_numbers<[2], [1], [1], [2], [0, 0, 0, 1, 1, 2], [0], [0]>} : vector<4x8x8xf32>, vector<4x8x8xf32>, vector<4x8x8xf32> -> vector<4x8x8xf32>
    "tpu.trace_stop"() : () -> ()
    %57 = vector.extract_strided_slice %56 {offsets = [0, 0, 0], sizes = [1, 8, 8], strides = [1, 1, 1]} : vector<4x8x8xf32> to vector<1x8x8xf32>
    %58 = vector.shape_cast %57 : vector<1x8x8xf32> to vector<8x8xf32>
    %c0_19 = arith.constant 0 : index
    %c0_20 = arith.constant 0 : index
    %59 = vector.load %arg9[%c0_19, %c0_20] : memref<8x32xf32, #tpu.memory_space<vmem>>, vector<8x8xf32>
    tpu.vector_store %arg9[%c0_19, %c0_20], %58 {strides = array<i32>} : memref<8x32xf32, #tpu.memory_space<vmem>>, vector<8x8xf32>,
    %60 = vector.extract_strided_slice %56 {offsets = [1, 0, 0], sizes = [1, 8, 8], strides = [1, 1, 1]} : vector<4x8x8xf32> to vector<1x8x8xf32>
    %61 = vector.shape_cast %60 : vector<1x8x8xf32> to vector<8x8xf32>
    %c0_21 = arith.constant 0 : index
    %c8 = arith.constant 8 : index
    %62 = vector.load %arg9[%c0_21, %c8] : memref<8x32xf32, #tpu.memory_space<vmem>>, vector<8x8xf32>
    tpu.vector_store %arg9[%c0_21, %c8], %61 {strides = array<i32>} : memref<8x32xf32, #tpu.memory_space<vmem>>, vector<8x8xf32>,
    %63 = vector.extract_strided_slice %56 {offsets = [2, 0, 0], sizes = [1, 8, 8], strides = [1, 1, 1]} : vector<4x8x8xf32> to vector<1x8x8xf32>
    %64 = vector.shape_cast %63 : vector<1x8x8xf32> to vector<8x8xf32>
    %c0_22 = arith.constant 0 : index
    %c16 = arith.constant 16 : index
    %65 = vector.load %arg9[%c0_22, %c16] : memref<8x32xf32, #tpu.memory_space<vmem>>, vector<8x8xf32>
    tpu.vector_store %arg9[%c0_22, %c16], %64 {strides = array<i32>} : memref<8x32xf32, #tpu.memory_space<vmem>>, vector<8x8xf32>,
    %66 = vector.extract_strided_slice %56 {offsets = [3, 0, 0], sizes = [1, 8, 8], strides = [1, 1, 1]} : vector<4x8x8xf32> to vector<1x8x8xf32>
    %67 = vector.shape_cast %66 : vector<1x8x8xf32> to vector<8x8xf32>
    %c0_23 = arith.constant 0 : index
    %c24 = arith.constant 24 : index
    %68 = vector.load %arg9[%c0_23, %c24] : memref<8x32xf32, #tpu.memory_space<vmem>>, vector<8x8xf32>
    tpu.vector_store %arg9[%c0_23, %c24], %67 {strides = array<i32>} : memref<8x32xf32, #tpu.memory_space<vmem>>, vector<8x8xf32>,
    %c0_24 = arith.constant 0 : index
    %c0_25 = arith.constant 0 : index
    %69 = vector.load %arg9[%c0_24, %c0_25] : memref<8x32xf32, #tpu.memory_space<vmem>>, vector<8x32xf32>
    %c0_26 = arith.constant 0 : index
    %c0_27 = arith.constant 0 : index
    %c0_28 = arith.constant 0 : index
    %70 = vector.load %arg8[%c0_26, %c0_27, %c0_28] : memref<1x8x32xf32, #tpu.memory_space<vmem>>, vector<1x8x32xf32>
    %71 = vector.shape_cast %70 : vector<1x8x32xf32> to vector<8x32xf32>
    %72 = vector.shape_cast %69 : vector<8x32xf32> to vector<1x8x32xf32>
    tpu.vector_store %arg8[%c0_26, %c0_27, %c0_28], %72 {strides = array<i32>} : memref<1x8x32xf32, #tpu.memory_space<vmem>>, vector<1x8x32xf32>,
    return
  }
  func.func @transform_0(%arg0: i32, %arg1: i32) -> (i32, i32, i32) {
    %c0_i32 = arith.constant 0 : i32
    %c0_i32_0 = arith.constant 0 : i32
    return %arg0, %arg1, %c0_i32 : i32, i32, i32
  }
  func.func @transform_1(%arg0: i32, %arg1: i32) -> (i32, i32, i32) {
    %c0_i32 = arith.constant 0 : i32
    %c0_i32_0 = arith.constant 0 : i32
    %c0_i32_1 = arith.constant 0 : i32
    return %arg0, %c0_i32, %c0_i32_0 : i32, i32, i32
  }
  func.func @transform_2(%arg0: i32, %arg1: i32) -> (i32, i32) {
    %c0_i32 = arith.constant 0 : i32
    %c0_i32_0 = arith.constant 0 : i32
    %c0_i32_1 = arith.constant 0 : i32
    return %c0_i32, %c0_i32_0 : i32, i32
  }
  func.func @transform_3(%arg0: i32, %arg1: i32) -> (i32, i32) {
    %c0_i32 = arith.constant 0 : i32
    %c0_i32_0 = arith.constant 0 : i32
    %c0_i32_1 = arith.constant 0 : i32
    return %c0_i32, %c0_i32_0 : i32, i32
  }
  func.func @transform_4(%arg0: i32, %arg1: i32) -> (i32, i32) {
    %c0_i32 = arith.constant 0 : i32
    %c0_i32_0 = arith.constant 0 : i32
    %c0_i32_1 = arith.constant 0 : i32
    return %c0_i32, %c0_i32_0 : i32, i32
  }
  func.func @transform_5(%arg0: i32, %arg1: i32) -> (i32, i32) {
    %c0_i32 = arith.constant 0 : i32
    %c0_i32_0 = arith.constant 0 : i32
    %c0_i32_1 = arith.constant 0 : i32
    return %c0_i32, %c0_i32_0 : i32, i32
  }
  func.func @transform_6(%arg0: i32, %arg1: i32) -> (i32, i32, i32) {
    %c0_i32 = arith.constant 0 : i32
    %c0_i32_0 = arith.constant 0 : i32
    return %arg0, %arg1, %c0_i32 : i32, i32, i32
  }
}

</mosaic_0001>

<bundles_post_ra>
// kernel: tpu_custom_call.1
= control target key start
LH: loop header
LB: loop body
LE: loop exit
PB: predicated region body
PF: predicated region fallthrough
CT: control target
= control target key end

     0   :  { %s1543_s0 = inlined_call_operand.hbm [shape: f32[2,8,32], index: 0, kind: input, shape index: {}]   ;;  %s1544_s1 = inlined_call_operand.hbm [shape: f32[2,8,32], index: 1, kind: input, shape index: {}]   ;;  %s1545_s2 = inlined_call_operand.hbm [shape: f32[32,32], index: 2, kind: input, shape index: {}]   ;;  %s1546_s3 = inlined_call_operand.vmem [shape: f32[1,32], index: 3, kind: input, shape index: {}]   ;;  %s1547_s4 = inlined_call_operand.hbm [shape: f32[32,64], index: 4, kind: input, shape index: {}]   ;;  %s1548_s5 = inlined_call_operand.vmem [shape: f32[1,64], index: 5, kind: input, shape index: {}]   ;;  %s1549_s6 = inlined_call_operand.hbm [shape: f32[2,8,32], index: 6, kind: output, shape index: {}]  }
   0x1   :  { %1554 = sst [smem:[#allocation22_spill]] %s1545_s2 }
   0x2   :  { %1555 = sst [smem:[#allocation23_spill]] %s1547_s4 }
   0x3   :  { %11 = vsyncpa [#allocation4], 0 }
   0x4   :  { %13 = vsyncpa [#allocation4 + $0x1], 0 }
   0x5   :  { %14 = vsyncpa [#allocation7], 0 }
   0x6   :  { %16 = vsyncpa [#allocation7 + $0x1], 0 }
   0x7   :  { %17 = vsyncpa [#allocation10], 0 }
   0x8   :  { %18 = vsyncpa [#allocation5], 0 }
   0x9   :  { %20 = vsyncpa [#allocation5 + $0x1], 0  ;;  %s1314_s21 = smov 0   ;;  %s1316_s22 = smov 0  }
   0xa   :  { %s1318_s23 = smov 0   ;;  %s1320_s24 = smov 0  }
   0xb   :  { %s1322_s25 = smov 0   ;;  %s1324_s26 = smov 0  }
   0xc LB: > { %1556 = sst [smem:[#allocation17_spill]] %s1254_s23  ;;  %s1345_s27 = sadd.s32 4294967295, %s1266_s26   ;;  %s1266_s26 = sphi %s1324_s26, %s26_s26   ;;  %s1262_s25 = sphi %s1322_s25, %s1572_s25   ;;  %s1258_s24 = sphi %s1320_s24, %s1571_s24   ;;  %s1254_s23 = sphi %s1318_s23, %s1570_s23   ;;  %s1250_s22 = sphi %s1316_s22, %s1574_s22   ;;  %s1246_s21 = sphi %s1314_s21, %s1573_s21  }
   0xd   : > { %1557 = sst [smem:[#allocation18_spill]] %s1262_s25  ;;  %p900_p0 = scmp.ge.s32.totalorder %s1266_s26, 1 }
   0xe   : > { %p61_p1 = scmp.eq.s32.totalorder %s1345_s27, 0  ;;  %p209_p2 = scmp.lt.s32.totalorder %s1266_s26, 3 }
   0xf   : > { %s1558_s2 = sld [smem:[#allocation22_spill]]  ;;  %s1268_s8 = smov [#allocation8]  }
  0x10   : > { %p1353_p3 = pnand %p900_p0, %p209_p2  ;;  %s222_s9 = sshll.u32 %s1268_s8, 4  ;;  %s223_s9 = int_to_ptr.vmem [resolvable:$true] %s222_s9 }
  0x11   : > { %p903_p6 = scmp.ge.s32.totalorder %s1266_s26, 2  ;;  %s1560_s4 = sld [smem:[#allocation23_spill]] }
  0x12   : > { %p946_p4 = pneg %p1353_p3  ;;  %s1269_s13 = smov 128  }
  0x13   : > { %s1270_s14 = smov 8   ;;  %s1271_s15 = smov [#allocation9]  }
  0x14   : > { %p947_p5 = pnand %p946_p4, %p61_p1  ;;  %s239_s16 = sshll.u32 %s1271_s15, 4  ;;  %s240_s16 = int_to_ptr.vmem [resolvable:$true] %s239_s16 }
  0x15   : > { %s220_s30 = sshll.u32 %s1558_s2, 4  ;;  %s899_s17 = sadd.s32 4294967294, %s1266_s26   ;;  %s221_s30 = int_to_ptr.hbm [resolvable:$true] %s220_s30 }
  0x16   : > { %949 = dma.hbm_to_vmem [thread:$0]  (!%p947_p5), %s221_s30, 512, %s223_s9, [#allocation7], %s1269_s13, %s1269_s13, %s1270_s14  }
  0x17   : > { %s237_s12 = sshll.u32 %s1560_s4, 4  ;;  %s38_s18 = sadd.s32 1, %s1262_s25  ;;  %s238_s12 = int_to_ptr.hbm [resolvable:$true] %s237_s12 }
  0x18   : > { %952 = dma.hbm_to_vmem [thread:$0]  (!%p947_p5), %s238_s12, 512, %s240_s16, [#allocation10], %s1269_s13, %s1269_s13, %s1270_s14  }
  0x19   : > { %p40_p7 = scmp.ge.s32.totalorder %s38_s18, 2  ;;  %s47_s19 = sadd.s32 1, %s1254_s23 }
  0x1a   : > { %p54_p8 = scmp.ne.s32.totalorder %s1254_s23, %s1250_s22  ;;  %p55_p9 = scmp.eq.s32.totalorder %s1266_s26, 0 }
  0x1b   : > { %s1576_s18 = smov (%p40_p7, %s38_s18), 0  ;;  %p60_p11 = scmp.ne.s32.totalorder %s1250_s22, %s1246_s21 }
  0x1c   : > { %1561 = sst [smem:[#allocation19_spill]] %s1576_s18  ;;  %p1373_p10 = por %p55_p9, %p54_p8 }
  0x1d   : > { %s42_s28 = ssub.s32 %s1262_s25, %s1576_s18  ;;  %p196_p12 = scmp.eq.s32.totalorder %s1345_s27, 1 }
  0x1e   : > { %p45_p13 = scmp.eq.s32.totalorder %s42_s28, 0  ;;  %p1384_p0 = por %p61_p1, %p60_p11 }
  0x1f   : > { %p1388_p2 = por %p196_p12, %p54_p8  ;;  %p202_p4 = scmp.eq.s32.totalorder %s899_s17, 1 }
  0x20   : > { %s1393_s8 = scalar_select %p45_p13, %s1254_s23, %s47_s19  }
  0x21   : > { %p1395_p5 = por %p202_p4, %p60_p11  ;;  %p966_p7 = scmp.lt.s32.totalorder %s1266_s26, 2 }
  0x22   : > { %1565 = sst [smem:[#allocation20_spill]] %s1393_s8  ;;  %s256_s10 = sand.u32 1, %s1254_s23  }
  0x23   : > { %s1566_s9 = scalar_select %p1395_p5, 1, 0 }
  0x24   : > { %s905_s11 = sshll.u32 %s1262_s25, 3  ;;  %s904_s12 = sshll.u32 %s256_s10, 3 }
  0x25   : > { %1567 = sst [smem:[#allocation21_spill]] %s1566_s9  ;;  %s265_s15 = scalar_lea.hbm %s1543_s0, %s905_s11 }
  0x26   : > { %s267_s16 = sshll.u32 %s265_s15, 4  ;;  %s260_s28 = scalar_lea.vmem [#allocation3], %s904_s12  ;;  %s268_s16 = int_to_ptr.hbm [resolvable:$true] %s267_s16 }
  0x27   : > { %s269_s2 = sshll.u32 %s260_s28, 4  ;;  %p954_p8 = pnand %p966_p7, %p1373_p10  ;;  %s270_s2 = int_to_ptr.vmem [resolvable:$true] %s269_s2 }
  0x28   : > { %s284_s4 = scalar_lea.hbm %s1544_s1, %s905_s11  ;;  %s276_s18 = sand.u32 1, %s1266_s26  }
  0x29   : > { %s257_s8 = scalar_lea.sflag [#allocation4], %s256_s10  ;;  %s286_s25 = sshll.u32 %s284_s4, 4  ;;  %s287_s25 = int_to_ptr.hbm [resolvable:$true] %s286_s25 }
  0x2a   : > { %956 = dma.hbm_to_vmem [thread:$0]  (!%p954_p8), %s268_s16, 128, %s270_s2, %s257_s8  }
  0x2b   : > { %s280_s23 = scalar_lea.vmem [#allocation6], %s904_s12  ;;  %s277_s13 = scalar_lea.sflag [#allocation7], %s276_s18 }
  0x2c   : > { %s288_s9 = sshll.u32 %s280_s23, 4  ;;  %297 = sbr.rel (%p1353_p3) target bundleno = 989 (0x3dd), region = 44  ;;  %s289_s9 = int_to_ptr.vmem [resolvable:$true] %s288_s9 }
  0x2d   : > { %959 = dma.hbm_to_vmem [thread:$0]  (!%p954_p8), %s287_s25, 128, %s289_s9, %s277_s13  }
  0x2e   : > { %s1414_s20 = sand.u32 (!%p1353_p3), 1, %s1250_s22  }
  0x2f   : > { %s1417_s11 = sshll.u32 (!%p1353_p3), %s1414_s20, 3  ;;  %s300_s2 = scalar_lea.sflag (!%p1353_p3), [#allocation4], %s1414_s20 }
  0x30   : > { %s303_s4 = scalar_lea.vmem (!%p1353_p3), [#allocation3], %s1417_s11 }
  0x31   : > { %1225 = dma.done.wait (%p1384_p0), %s300_s2, 128  }
  0x32   : > { %1227 = vsyncadd (%p1384_p0), %s300_s2, 4294967168  ;;  %s309_s23 = sand.u32 1, %s1345_s27   ;;  %s313_s7 = scalar_lea.vmem [#allocation6], %s1417_s11 }
  0x33   : > { %s310_s25 = scalar_lea.sflag [#allocation7], %s309_s23 }
  0x34   : > { %1229 = dma.done.wait (%p1384_p0), %s310_s25, 128  }
  0x35   : > { %1231 = vsyncadd (%p1384_p0), %s310_s25, 4294967168 }
  0x36   : > { %1233 = dma.done.wait (%p61_p1), [#allocation7], 512  }
  0x37   : > { %1235 = vsyncadd (%p61_p1), [#allocation7], 4294966784 }
  0x38   : > { %1237 = dma.done.wait (%p61_p1), [#allocation10], 512  }
  0x39   : > { %1239 = vsyncadd (%p61_p1), [#allocation10], 4294966784  ;;  %v362_v0 = vld [vmem:[#allocation8 + $0x18] sm:$0xff]  ;;  %v361_v2 = vld [vmem:[#allocation8 + $0x10] sm:$0xff]  ;;  %vm367_vm0 = vcmask 261120   ;;  %vm437_vm1 = vcmask 64512  }
  0x3a   : > { %v395_v1 = vld [vmem:[#allocation9 + $0x18] sm:$0xff]  ;;  %383 = vmatpush.msra.mxu0 %v362_v0  ;;  %v394_v3 = vld [vmem:[#allocation9 + $0x10] sm:$0xff]  ;;  %v360_v4 = vld [vmem:[#allocation8 + $0x8] sm:$0xff]  ;;  %s1272_s9 = smov 112   ;;  %s1273_s10 = smov 120  }
  0x3b   : > { %415 = vmatpush.msra.mxu1 %v395_v1  ;;  %v393_v5 = vld [vmem:[#allocation9 + $0x8] sm:$0xff]  ;;  %v359_v6 = vld [vmem:[#allocation8] sm:$0xff]  ;;  %v391_v9 = vld [vmem:[%s313_s7] sm:$0xff]  ;;  %s1274_s12 = smov 104   ;;  %s1275_s14 = smov 96  }
  0x3c   : > { %384 = vmatpush.msra.mxu0 %v361_v2  ;;  %v392_v7 = vld [vmem:[#allocation9] sm:$0xff]  ;;  %v1034_v10 = vld [vmem:[%s1546_s3] ss:$0 sm:$0xff]  ;;  %s1276_s15 = smov 16   ;;  %s1277_s16 = smov 8  }
  0x3d   : > { %416 = vmatpush.msra.mxu1 %v394_v3  ;;  %v358_v8 = vld [vmem:[%s303_s4] sm:$0xff]  ;;  %v1035_v11 = vld [vmem:[%s1548_s5] ss:$0 sm:$0xff]  ;;  %s1278_s28 = smov 24   ;;  %s929_s17 = sshll.u32 %s1258_s24, 3 }
  0x3e   : > { %385 = vmatpush.msra.mxu0 %v360_v4  ;;  %s771_s2 = scalar_lea.hbm %s1549_s6, %s929_s17  ;;  %s357_s4 = scalar_lea.vmem [#allocation11], %s1417_s11 }
  0x3f   : > { %417 = vmatpush.msra.mxu1 %v393_v5  ;;  %s773_s23 = sshll.u32 %s357_s4, 4  ;;  %s775_s25 = sshll.u32 %s771_s2, 4  ;;  %s774_s23 = int_to_ptr.vmem [resolvable:$true] %s773_s23  ;;  %s776_s25 = int_to_ptr.hbm [resolvable:$true] %s775_s25 }
  0x40   : > { %386 = vmatpush.msra.mxu0 %v359_v6  ;;  %s760_s7 = scalar_lea.sflag [#allocation5], %s1414_s20  ;;  %s1186_s27 = sshra.s32 %s776_s25, 4  ;;  %s1187_s27 = int_to_ptr.hbm [resolvable:$true] %s1186_s27 }
  0x41   : > { %418 = vmatpush.msra.mxu1 %v392_v7  ;;  %914 = vmatmul.msk.f32.vlgmr.msra.gmra.mxu0 %vm367_vm0, %v358_v8  ;;  %s1188_s18 = scalar_lea.hbm %s1187_s27, 8  ;;  %s1192_s8 = scalar_lea.hbm %s1549_s6, 16 }
  0x42   : > { %915 = vmatmul.msk.f32.vlgmr.msra.gmra.mxu1 %vm367_vm0, %v391_v9  ;;  %p1189_p1 = scmp.ne.s32.totalorder %s1187_s27, %s1188_s18  ;;  %p1193_p10 = scmp.lt.s32.totalorder %s1187_s27, %s1549_s6 }
  0x43   : > { %p1194_p11 = scmp.lt.s32.totalorder %s1192_s8, %s1188_s18 }
  0x44   : > { %p1190_p3 = pnand %p1189_p1, %p1388_p2 }
  0x45   : > { %p1195_p12 = por %p1194_p11, %p1193_p10 }
  0x46   : > { %p1191_p9 = pneg %p1190_p3 }
  0x48   : > { %p1196_p13 = pnand %p1195_p12, %p1191_p9 }
  0xbe   : > { %v388_v12 = vpop.f32.mrf.mxu0 }
  0xbf   : > { %v420_v13 = vpop.f32.mrf.mxu1  ;;  %v389_v14 = vadd.f32 %v1034_v10, %v388_v12 }
  0xc0   : > { %v1447_v15 = vadd.f32 %v1035_v11, %v420_v13 }
  0xc1   : > { %426 = vrot.lane.b32.xlu2 %v389_v14, %s1272_s9 }
  0xc2   : > { %433 = vrot.lane.b32.xlu1 %v1447_v15, %s1272_s9  ;;  %431 = vrot.lane.b32.xlu0 %v1447_v15, %s1273_s10 }
  0xc3   : > { %916 = vmatpush.xpose.msk.msra.mxu2 %vm437_vm1, %v1447_v15 }
  0xc6   : > { %917 = vmatmul.msk.f32.vlgmr.msra.gmra.mxu2 %vm437_vm1, %v389_v14 }
  0xc9   : > { %428 = vrot.lane.b32.xlu2 %v389_v14, %s1274_s12 }
  0xca   : > { %435 = vrot.lane.b32.xlu1 %v1447_v15, %s1274_s12  ;;  %424 = vrot.lane.b32.xlu0 %v389_v14, %s1273_s10 }
 0x11b   : > { %v427_v18 = vpop.permute.xlu2 %426 }
 0x123   : > { %v429_v21 = vpop.permute.xlu2 %428 }
 0x134   : > { %v434_v16 = vpop.permute.xlu1 %433  ;;  %v432_v17 = vpop.permute.xlu0 %431 }
 0x135   : > { %918 = vmatpush.xpose.msk.msra.mxu3 %vm437_vm1, %v432_v17  ;;  %920 = vmatpush.xpose.msk.msrb.mxu2 %vm437_vm1, %v434_v16 }
 0x138   : > { %921 = vmatmul.msk.f32.vlgmr.msrb.gmra.mxu2 %vm437_vm1, %v427_v18 }
 0x13c   : > { %v436_v19 = vpop.permute.xlu1 %435  ;;  %v425_v20 = vpop.permute.xlu0 %424 }
 0x13d   : > { %919 = vmatmul.msk.f32.vlgmr.msra.gmra.mxu3 %vm437_vm1, %v425_v20  ;;  %v1029_v54 = vpack.i.bf16 %v436_v19, %v434_v16 }
 0x13e   : > { %922 = vmatpush.xpose.msk.msrb.mxu3 %vm437_vm1, %v436_v19 }
 0x145   : > { %923 = vmatmul.msk.f32.vlgmr.msrb.gmra.mxu3 %vm437_vm1, %v429_v21 }
 0x149   : > { %v459_v22 = vpop.f32.mrf.mxu2 }
 0x14a   : > { %v534_v29 = vmul.f32 0.35355338, %v459_v22 }
 0x14c   : > { %v538_v33 = vsel %vm437_vm1, %v534_v29, -inf }
 0x1bb   : > { %v507_v23 = vpop.f32.mrf.mxu2 }
 0x1bc   : > { %v536_v24 = vmul.f32 0.35355338, %v507_v23 }
 0x1be   : > { %v544_v25 = vsel %vm437_vm1, %v536_v24, -inf }
 0x1bf   : > { %545 = vmax.xlane.f32.xlu0 %v544_v25 }
 0x1c0   : > { %v483_v26 = vpop.f32.mrf.mxu3 }
 0x1c1   : > { %v535_v27 = vmul.f32 0.35355338, %v483_v26 }
 0x1c3   : > { %v541_v28 = vsel %vm437_vm1, %v535_v27, -inf }
 0x1c4   : > { %542 = vmax.xlane.f32.xlu2 %v541_v28 }
 0x1c8   : > { %v531_v30 = vpop.f32.mrf.mxu3 }
 0x1c9   : > { %v537_v31 = vmul.f32 0.35355338, %v531_v30 }
 0x1cb   : > { %v547_v32 = vsel %vm437_vm1, %v537_v31, -inf }
 0x1cc   : > { %548 = vmax.xlane.f32.xlu1 %v547_v32  ;;  %539 = vmax.xlane.f32.xlu2 %v538_v33 }
 0x232   : > { %v546_v34 = vpop.xlane.xlu0 %545 }
 0x233   : > { %v552_v35 = vsub.f32 %v536_v24, %v546_v34 }
 0x235   : > { %v558_v36 = vmul.f32 1.442695, %v552_v35 }
 0x237   : > { %1036 = vpow2.f32 %v558_v36  ;;  %v543_v37 = vpop.xlane.xlu2 %542 }
 0x238   : > { %v551_v38 = vsub.f32 %v535_v27, %v543_v37 }
 0x23a   : > { %v556_v39 = vmul.f32 1.442695, %v551_v38 }
 0x23c   : > { %1038 = vpow2.f32 %v556_v39 }
 0x23d   : > { %v1037_v40 = vpop.eup %1036 }
 0x23e   : > { %v568_v41 = vsel %vm437_vm1, %v1037_v40, 0.0 }
 0x23f   : > { %v549_v42 = vpop.xlane.xlu1 %548  ;;  %v540_v43 = vpop.xlane.xlu2 %539  ;;  %569 = vadd.xlane.f32.xlu0 %v568_v41 }
 0x240   : > { %v553_v44 = vsub.f32 %v537_v31, %v549_v42  ;;  %v550_v45 = vsub.f32 %v534_v29, %v540_v43 }
 0x242   : > { %v1466_v46 = vpop.eup %1038  ;;  %v560_v47 = vmul.f32 1.442695, %v553_v44  ;;  %v554_v48 = vmul.f32 1.442695, %v550_v45 }
 0x243   : > { %v565_v49 = vsel %vm437_vm1, %v1466_v46, 0.0 }
 0x244   : > { %1040 = vpow2.f32 %v560_v47  ;;  %566 = vadd.xlane.f32.xlu2 %v565_v49 }
 0x245   : > { %1042 = vpow2.f32 %v554_v48 }
 0x24a   : > { %v1470_v50 = vpop.eup %1040 }
 0x24b   : > { %v1472_v51 = vpop.eup %1042  ;;  %v571_v52 = vsel %vm437_vm1, %v1470_v50, 0.0 }
 0x24c   : > { %572 = vadd.xlane.f32.xlu1 %v571_v52  ;;  %v562_v53 = vsel %vm437_vm1, %v1472_v51, 0.0 }
 0x24d   : > { %563 = vadd.xlane.f32.xlu2 %v562_v53 }
 0x253   : > { %1030 = vrot.lane.b32.xlu0 %v1029_v54, %s1275_s14 }
 0x265   : > { %634 = vrot.lane.b32.xlu2 %v1447_v15, %s1275_s14  ;;  %660 = vrot.lane.b32.xlu1 %v432_v17, %s1275_s14 }
 0x2b2   : > { %v570_v55 = vpop.xlane.xlu0 %569 }
 0x2b3   : > { %1044 = vrcp.f32 %v570_v55  ;;  %v613_v62 = vand.u32 2147483648, %v570_v55  ;;  %v611_v63 = vand.u32 2147483647, %v570_v55  ;;  %vm607_vm3 = vweird.f32 %v570_v55 }
 0x2b5   : > { %v614_v5 = vor.u32 1.1754944e-38, %v613_v62  ;;  %vm612_vm5 = vcmp.eq.f32.partialorder %v611_v63, 8.507059e+37 }
 0x2b7   : > { %v1479_v56 = vpop.xlane.xlu2 %566 }
 0x2b8   : > { %1046 = vrcp.f32 %v1479_v56  ;;  %vm593_vm7 = vweird.f32 %v1479_v56  ;;  %v599_v28 = vand.u32 2147483648, %v1479_v56  ;;  %v597_v31 = vand.u32 2147483647, %v1479_v56 }
 0x2b9   : > { %v1045_v57 = vpop.eup %1044 }
 0x2ba   : > { %v603_v58 = vmul.f32 %v1045_v57, %v570_v55  ;;  %vm608_vm2 = vweird.f32 %v1045_v57  ;;  %v600_v39 = vor.u32 1.1754944e-38, %v599_v28 }
 0x2bb   : > { %vm609_vm4 = vmor %vm607_vm3, %vm608_vm2  ;;  %vm598_vm3 = vcmp.eq.f32.partialorder %v597_v31, 8.507059e+37 }
 0x2bc   : > { %v604_v59 = vsub.f32 1.0, %v603_v58 }
 0x2be   : > { %v1482_v60 = vpop.eup %1046  ;;  %v605_v61 = vmul.f32 %v1045_v57, %v604_v59 }
 0x2bf   : > { %v573_v0 = vpop.xlane.xlu1 %572  ;;  %v589_v3 = vmul.f32 %v1482_v60, %v1479_v56  ;;  %vm594_vm9 = vweird.f32 %v1482_v60 }
 0x2c0   : > { %v606_v1 = vadd.f32 %v1045_v57, %v605_v61  ;;  %1048 = vrcp.f32 %v573_v0  ;;  %v564_v2 = vpop.xlane.xlu2 %563  ;;  %v627_v19 = vand.u32 2147483648, %v573_v0  ;;  %v625_v22 = vand.u32 2147483647, %v573_v0  ;;  %vm595_vm15 = vmor %vm593_vm7, %vm594_vm9 }
 0x2c1   : > { %1050 = vrcp.f32 %v564_v2  ;;  %v590_v7 = vsub.f32 1.0, %v589_v3  ;;  %v585_v23 = vand.u32 2147483648, %v564_v2  ;;  %v583_v25 = vand.u32 2147483647, %v564_v2 }
 0x2c2   : > { %v610_v4 = vsel %vm609_vm4, %v1045_v57, %v606_v1  ;;  %vm621_vm10 = vweird.f32 %v573_v0  ;;  %v628_v29 = vor.u32 1.1754944e-38, %v627_v19  ;;  %vm579_vm12 = vweird.f32 %v564_v2 }
 0x2c3   : > { %v615_v6 = vsel %vm612_vm5, %v614_v5, %v610_v4  ;;  %v591_v17 = vmul.f32 %v1482_v60, %v590_v7  ;;  %vm626_vm13 = vcmp.eq.f32.partialorder %v625_v22, 8.507059e+37  ;;  %v586_v33 = vor.u32 1.1754944e-38, %v585_v23 }
 0x2c4   : > { %v632_v14 = vmul.f32 %v1037_v40, %v615_v6  ;;  %vm584_vm2 = vcmp.eq.f32.partialorder %v583_v25, 8.507059e+37  ;;  %vm743_vm4 = vcmask 130112   ;;  %vm749_vm5 = vcmask 195712  }
 0x2c5   : > { %v1031_v8 = vpop.permute.xlu0 %1030  ;;  %v592_v26 = vadd.f32 %v1482_v60, %v591_v17 }
 0x2c6   : > { %v1049_v9 = vpop.eup %1048  ;;  %v1033_v10 = vunpack.i.h.bf16 %v1031_v8  ;;  %v1032_v11 = vunpack.i.l.bf16 %v1031_v8 }
 0x2c7   : > { %v1051_v12 = vpop.eup %1050  ;;  %v617_v13 = vmul.f32 %v1049_v9, %v573_v0  ;;  %vm622_vm6 = vweird.f32 %v1049_v9  ;;  %v596_v38 = vsel %vm595_vm15, %v1482_v60, %v592_v26 }
 0x2c8   : > { %v575_v15 = vmul.f32 %v1051_v12, %v564_v2  ;;  %v635_v16 = vpop.permute.xlu2 %634  ;;  %707 = vmatpush.msra.mxu2 %v1032_v11  ;;  %733 = vmatpush.msra.mxu3 %v1033_v10  ;;  %vm580_vm8 = vweird.f32 %v1051_v12  ;;  %vm623_vm11 = vmor %vm621_vm10, %vm622_vm6  ;;  %v601_v41 = vsel %vm598_vm3, %v600_v39, %v596_v38  ;;  %vm755_vm6 = vcmask 261312  }
 0x2c9   : > { %v618_v18 = vsub.f32 1.0, %v617_v13  ;;  %655 = vmatpush.msrb.mxu0 %v635_v16  ;;  %926 = vmatmul.msk.f32.vlgmr.msra.gmra.mxu2 %vm437_vm1, %v632_v14  ;;  %vm581_vm14 = vmor %vm579_vm12, %vm580_vm8  ;;  %v631_v43 = vmul.f32 %v1466_v46, %v601_v41 }
 0x2ca   : > { %v576_v20 = vsub.f32 1.0, %v575_v15 }
 0x2cb   : > { %v619_v21 = vmul.f32 %v1049_v9, %v618_v18 }
 0x2cc   : > { %v577_v24 = vmul.f32 %v1051_v12, %v576_v20 }
 0x2cd   : > { %v620_v27 = vadd.f32 %v1049_v9, %v619_v21 }
 0x2ce   : > { %v578_v30 = vadd.f32 %v1051_v12, %v577_v24 }
 0x2cf   : > { %v624_v32 = vsel %vm623_vm11, %v1049_v9, %v620_v27 }
 0x2d0   : > { %v629_v34 = vsel %vm626_vm13, %v628_v29, %v624_v32  ;;  %v582_v35 = vsel %vm581_vm14, %v1051_v12, %v578_v30 }
 0x2d1   : > { %v587_v36 = vsel %vm584_vm2, %v586_v33, %v582_v35  ;;  %v633_v37 = vmul.f32 %v1470_v50, %v629_v34 }
 0x2d2   : > { %v630_v40 = vmul.f32 %v1472_v51, %v587_v36 }
 0x2d3   : > { %927 = vmatmul.msk.f32.vlgmr.msra.gmra.mxu3 %vm437_vm1, %v633_v37 }
 0x2d4   : > { %924 = vmatmul.msk.f32.vlgmr.msrb.gmra.mxu0 %vm437_vm1, %v630_v40 }
 0x2d7   : > { %v661_v42 = vpop.permute.xlu1 %660 }
 0x2d8   : > { %681 = vmatpush.msrb.mxu1 %v661_v42 }
 0x2d9   : > { %925 = vmatmul.msk.f32.vlgmr.msrb.gmra.mxu1 %vm437_vm1, %v631_v43 }
 0x34c   : > { %v709_v44 = vpop.f32.mrf.mxu2 }
 0x34d   : > { %746 = vrot.lane.b32.xlu1 %v709_v44, %s1276_s15 }
 0x351   : > { %v657_v45 = vpop.f32.mrf.mxu0 }
 0x352   : > { %738 = vst.msk [vmem:[#allocation2] sm:$0xff] %vm437_vm1, %v657_v45 }
 0x356   : > { %v683_v47 = vpop.f32.mrf.mxu1  ;;  %v735_v48 = vpop.f32.mrf.mxu3 }
 0x357   : > { %740 = vrot.lane.b32.xlu0 %v683_v47, %s1277_s16 }
 0x35f   : > { %752 = vrot.lane.b32.xlu0 %v735_v48, %s1278_s28 }
 0x3bf   : > { %v747_v49 = vpop.permute.xlu1 %746 }
 0x3c9   : > { %v741_v46 = vpop.permute.xlu0 %740 }
 0x3ca   : > { %744 = vst.msk [vmem:[#allocation2] sm:$0xff] %vm743_vm4, %v741_v46 }
 0x3cb   : > { %750 = vst.msk [vmem:[#allocation2] sm:$0xff] %vm749_vm5, %v747_v49 }
 0x3d1   : > { %v753_v50 = vpop.permute.xlu0 %752 }
 0x3d2   : > { %756 = vst.msk [vmem:[#allocation2] sm:$0xff] %vm755_vm6, %v753_v50 }
 0x3d9   : > { %v757_v51 = vld [vmem:[#allocation2] sm:$0xff] }
 0x3da   : > { %758 = vst.msk [vmem:[%s357_s4] sm:$0xff] %vm367_vm0, %v757_v51 }
 0x3db   : > { %1199 = shalt.err (!%p1196_p13)
}
 0x3dc   : > { %944 = dma.vmem_to_hbm [thread:$0]  (%p1388_p2), %s774_s23, 128, %s776_s25, %s760_s7  }
 0x3dd PF: > { %s787_s10 = sand.u32 1, %s1246_s21   ;;  %p961_p0 = pnand %p903_p6, %p1395_p5 }
 0x3de   : > { %s788_s12 = scalar_lea.sflag [#allocation5], %s787_s10 }
 0x3df   : > { %p962_p4 = pneg %p961_p0 }
 0x3e1   : > { %1241 = dma.done.wait (%p962_p4), %s788_s12, 128  }
 0x3e2   : > { %1243 = vsyncadd (%p962_p4), %s788_s12, 4294967168  ;;  %s26_s26 = sadd.s32 1, %s1266_s26   ;;  %s1569_s14 = sld [smem:[#allocation17_spill]] }
 0x3e3   : > { %p23_p7 = scmp.ge.s32.totalorder %s26_s26, 4   ;;  %s1570_s23 = sld [smem:[#allocation20_spill]] }
 0x3e4   : > { %s1571_s24 = sld [smem:[#allocation18_spill]]  ;;  %s1573_s21 = smov %s1250_s22 }
 0x3e5   : > { %s1572_s25 = sld [smem:[#allocation19_spill]]  ;;  %25 = sbr.rel (!%p23_p7) target bundleno = 12 (0xc), region = 110 }
 0x3e8   : > { %s1574_s22 = smov %s1569_s14 }
 0x3ea   :  { %794 = vsyncpa [#allocation4], 1 }
 0x3eb   :  { %796 = vsyncpa [#allocation4 + $0x1], 1 }
 0x3ec   :  { %797 = vsyncpa [#allocation7], 1 }
 0x3ed   :  { %799 = vsyncpa [#allocation7 + $0x1], 1 }
 0x3ee   :  { %800 = vsyncpa [#allocation10], 1 }
 0x3ef   :  { %801 = vsyncpa [#allocation5], 1 }
 0x3f0   :  { %803 = vsyncpa [#allocation5 + $0x1], 1 }

</bundles_post_ra>
